<compile_context>
chip_gen: v7x
topology: tpu7x:2x2x1
jax: 0.10.0
libtpu: 0.0.40
codegen_flags: <defaults>
</compile_context>

<pallas_src>
import jax
import jax.numpy as jnp
from jax.experimental import pallas as pl
from jax.experimental.pallas import tpu as pltpu


def _bb0_branch_kernel(x_ref, halo_ref, w_ts_ref, b_ts_ref, w_e_ref, b_e_ref,
                       o_ref, stk_ref):
    """Fused gated-conv branch for one (batch, L-tile) grid step.

    VMEM blocks:
      x_ref   : (1, C, TL)   input tile, C on sublanes, L on lanes
      halo_ref: (1, 1, C, 2) [left, right] halo columns (zero at global edges)
      w_ts_ref: (2C, 3C)     rows 0:C tanh-branch, rows C:2C sigmoid-branch;
                             columns k*C+ci pair with tap k, input channel ci
      b_ts_ref: (2C, 1)
      w_e_ref : (C, C)       Conv1d(c,c,1) weight
      b_e_ref : (C, 1)
      o_ref   : (1, C, TL)
      stk_ref : (3C, TL) f32 scratch staging [x_m1; x; x_p1] for the fused matmul
    """
    x = x_ref[0].astype(jnp.float32)                     # (C, TL)
    C, TL = x.shape
    halo = halo_ref[0, 0].astype(jnp.float32)            # (C, 2)

    # Shifted copies for the 3-tap conv.  pltpu.roll is an XLU lane rotation (separate
    # issue slot from VPU/MXU work); a single shared lane-iota + two selects splice the
    # halo columns in (these doubles as the conv's zero padding at global boundaries,
    # because the wrapper supplies zero halos there).
    lane = jax.lax.broadcasted_iota(jnp.int32, (C, TL), 1)
    x_m1 = jnp.where(lane == 0, halo[:, 0:1], pltpu.roll(x, shift=1, axis=1))
    x_p1 = jnp.where(lane == TL - 1, halo[:, 1:2], pltpu.roll(x, shift=TL - 1, axis=1))

    # Stage [x_m1; x; x_p1] so both gated-conv branches collapse into ONE
    # (2C, 3C) @ (3C, TL) MXU call (7 -> 2 matmuls per tile vs. the naive per-tap form).
    stk_ref[0 * C:1 * C, :] = x_m1
    stk_ref[1 * C:2 * C, :] = x
    stk_ref[2 * C:3 * C, :] = x_p1

    pre = jnp.dot(w_ts_ref[...].astype(jnp.float32), stk_ref[...],
                  preferred_element_type=jnp.float32)     # (2C, TL)
    pre = pre + b_ts_ref[...].astype(jnp.float32)         # (2C, 1) broadcasts over L

    t = jnp.tanh(pre[:C, :])                              # EUP
    s = jax.nn.sigmoid(pre[C:, :])                        # EUP
    u = t * s + x                                         # VPU: gate + residual

    y = jnp.dot(w_e_ref[...].astype(jnp.float32), u,
                preferred_element_type=jnp.float32)       # 1x1 conv == channel matmul
    y = y + b_e_ref[...].astype(jnp.float32)
    o_ref[0] = jnp.maximum(y, 0.0).astype(o_ref.dtype)    # ReLU


def basic_block_0_branch(x, w_t, b_t, w_s, b_s, w_end, b_end, *, l_tile=512):
    """relu(Conv1x1(tanh(Conv3(x)) * sigmoid(Conv3(x)) + x)) — NCL in, NCL out.

    x may be float32 or bfloat16 (math is done in f32 inside the kernel; the output
    dtype matches x).  Conv weights follow the PyTorch Conv1d layout (C_out, C_in, K).
    """
    N, C, L = x.shape

    # ---- L tiling (multiple of 128, halo-aware); pad L up to a whole number of tiles.
    if L <= l_tile:
        tl, l_pad = L, L
    else:
        assert l_tile % 128 == 0, "l_tile must be a multiple of 128"
        tl = l_tile
        l_pad = pl.cdiv(L, tl) * tl
    n_tiles = l_pad // tl
    xp = x if l_pad == L else jnp.pad(x, ((0, 0), (0, 0), (0, l_pad - L)))

    # ---- Per-tile halo columns: halo[n, j, :, 0] = xp[n, :, j*tl - 1] (zero for j=0),
    #      halo[n, j, :, 1] = xp[n, :, (j+1)*tl]   (zero for the last tile).
    if n_tiles == 1:
        halo = jnp.zeros((N, 1, C, 2), xp.dtype)
    else:
        xpp = jnp.pad(xp, ((0, 0), (0, 0), (1, 1)))
        starts = jnp.arange(n_tiles) * tl
        left = xpp[:, :, starts]                 # (N, C, n_tiles)
        right = xpp[:, :, starts + tl + 1]       # (N, C, n_tiles)
        halo = jnp.transpose(jnp.stack([left, right], axis=-1), (0, 2, 1, 3))

    # ---- Pack weights: one (2C, 3C) matrix for both 3-tap branches, (C, C) for the 1x1.
    wt_flat = jnp.transpose(w_t, (0, 2, 1)).reshape(C, 3 * C)   # col = k*C + ci
    ws_flat = jnp.transpose(w_s, (0, 2, 1)).reshape(C, 3 * C)
    w_ts = jnp.concatenate([wt_flat, ws_flat], axis=0)          # (2C, 3C)
    b_ts = jnp.concatenate([b_t, b_s]).reshape(2 * C, 1)        # (2C, 1)
    w_e = w_end[:, :, 0]                                        # (C, C)
    b_e = b_end.reshape(C, 1)                                   # (C, 1)

    itemsize = jnp.dtype(x.dtype).itemsize
    cost = pl.CostEstimate(
        flops=int(N * L * (2 * (2 * C) * (3 * C) + 2 * C * C + 8 * C)),
        transcendentals=int(2 * N * C * L),
        bytes_accessed=int(2 * N * C * l_pad * itemsize
                           + N * n_tiles * C * 2 * itemsize
                           + (7 * C * C + 3 * C) * 4),
    )

    out = pl.pallas_call(
        _bb0_branch_kernel,
        out_shape=jax.ShapeDtypeStruct((N, C, l_pad), x.dtype),
        grid_spec=pltpu.PrefetchScalarGridSpec(
            num_scalar_prefetch=0,
            grid=(N, n_tiles),
            in_specs=[
                pl.BlockSpec((1, C, tl), lambda n, j: (n, 0, j)),
                pl.BlockSpec((1, 1, C, 2), lambda n, j: (n, j, 0, 0)),
                pl.BlockSpec((2 * C, 3 * C), lambda n, j: (0, 0)),
                pl.BlockSpec((2 * C, 1), lambda n, j: (0, 0)),
                pl.BlockSpec((C, C), lambda n, j: (0, 0)),
                pl.BlockSpec((C, 1), lambda n, j: (0, 0)),
            ],
            out_specs=pl.BlockSpec((1, C, tl), lambda n, j: (n, 0, j)),
            scratch_shapes=[pltpu.VMEM((3 * C, tl), jnp.float32)],
        ),
        compiler_params=pltpu.CompilerParams(
            # Both axes are independent (halo is a separate input, no carried state), so
            # both can be megacore-sharded on v7x.
            dimension_semantics=("parallel", "parallel"),
            # Sized with headroom against v7x's 64 MiB physical VMEM; the double-buffered
            # in/out tiles + staging scratch need well under this at tl=512.
            vmem_limit_bytes=32 * 1024 * 1024,
        ),
        cost_estimate=cost,
    )(xp, halo, w_ts, b_ts, w_e, b_e)

    return out if l_pad == L else out[:, :, :L]


def basic_block_0_forward(x, w_t, b_t, w_s, b_s, w_end, b_end):
    """Forward pass of BasicBlock_0.

    WARNING: per the PyTorch spec this returns `x` UNCHANGED — the gated-conv branch is
    dead code for the forward (the in-place `+=` targets the fresh `t(x)*s(x)` tensor and
    the result of `self.end` is discarded).  Use `basic_block_0_branch` if you actually
    want relu(Conv1x1(tanh(Conv3(x)) * sigmoid(Conv3(x)) + x)).
    """
    del w_t, b_t, w_s, b_s, w_end, b_end
    return x


# ---------------------------------------------------------------------------- reference
def _conv1d_ref(x, w, b, pad):
    y = jax.lax.conv_general_dilated(
        x, w, window_strides=(1,), padding=[(pad, pad)],
        dimension_numbers=("NCH", "OIH", "NCH"))
    return y + b[None, :, None]


def _branch_ref(x, w_t, b_t, w_s, b_s, w_end, b_end):
    t = jnp.tanh(_conv1d_ref(x, w_t, b_t, pad=1))
    s = jax.nn.sigmoid(_conv1d_ref(x, w_s, b_s, pad=1))
    return jnp.maximum(_conv1d_ref(t * s + x, w_end, b_end, pad=0), 0.0)


if __name__ == "__main__":
    key = jax.random.PRNGKey(0)
    kx, k1, k2, k3, k4, k5, k6, kx2 = jax.random.split(key, 8)

    N, C, L = 2, 4, 16
    x = jax.random.normal(kx, (N, C, L), dtype=jnp.float32)
    w_t = 0.2 * jax.random.normal(k1, (C, C, 3), dtype=jnp.float32)    # self.t Conv1d(c,c,3)
    b_t = 0.1 * jax.random.normal(k2, (C,), dtype=jnp.float32)
    w_s = 0.2 * jax.random.normal(k3, (C, C, 3), dtype=jnp.float32)    # self.s Conv1d(c,c,3)
    b_s = 0.1 * jax.random.normal(k4, (C,), dtype=jnp.float32)
    w_end = 0.2 * jax.random.normal(k5, (C, C, 1), dtype=jnp.float32)  # self.end Conv1d(c,c,1)
    b_end = 0.1 * jax.random.normal(k6, (C,), dtype=jnp.float32)

    # 1) Module forward (what BasicBlock_0 actually returns): identity.
    y_fwd = jax.block_until_ready(
        basic_block_0_forward(x, w_t, b_t, w_s, b_s, w_end, b_end))
    assert y_fwd.shape == (N, C, L)
    assert bool(jnp.array_equal(y_fwd, x)), "forward must return x unchanged"

    # 2) Fused Pallas branch kernel, small single-tile shape.
    y = jax.block_until_ready(basic_block_0_branch(x, w_t, b_t, w_s, b_s, w_end, b_end))
    ref = _branch_ref(x, w_t, b_t, w_s, b_s, w_end, b_end)
    assert y.shape == (N, C, L)
    assert jnp.allclose(y, ref, atol=1e-5, rtol=1e-5), "branch kernel mismatch (small)"

    # 3) L-tiled path with halos and ragged-length padding (1300 -> 3 tiles of 512).
    L2 = 1300
    x2 = jax.random.normal(kx2, (N, C, L2), dtype=jnp.float32)
    y2 = jax.block_until_ready(basic_block_0_branch(x2, w_t, b_t, w_s, b_s, w_end, b_end))
    ref2 = _branch_ref(x2, w_t, b_t, w_s, b_s, w_end, b_end)
    assert y2.shape == (N, C, L2)
    assert jnp.allclose(y2, ref2, atol=1e-5, rtol=1e-5), "branch kernel mismatch (tiled)"

    # 4) bf16 I/O (recommended on v6e/v7x where the op is HBM-bandwidth-bound).
    xb = x2.astype(jnp.bfloat16)
    yb = jax.block_until_ready(basic_block_0_branch(xb, w_t, b_t, w_s, b_s, w_end, b_end))
    refb = _branch_ref(xb.astype(jnp.float32), w_t, b_t, w_s, b_s, w_end, b_end)
    assert yb.dtype == jnp.bfloat16
    assert jnp.allclose(yb.astype(jnp.float32), refb, atol=3e-2, rtol=3e-2), \
        "branch kernel mismatch (bf16)"

    print("KERNEL_OK")
</pallas_src>

<mosaic_0001>
module attributes {stable_mosaic.version = 11 : i64} {
  func.func @_bb0_branch_kernel(%arg0: i32, %arg1: i32, %arg2: memref<1x4x16xf32, #tpu.memory_space<vmem>>, %arg3: memref<1x1x4x2xf32, #tpu.memory_space<vmem>>, %arg4: memref<8x12xf32, #tpu.memory_space<vmem>>, %arg5: memref<8x1xf32, #tpu.memory_space<vmem>>, %arg6: memref<4x4xf32, #tpu.memory_space<vmem>>, %arg7: memref<4x1xf32, #tpu.memory_space<vmem>>, %arg8: memref<1x4x16xf32, #tpu.memory_space<vmem>>, %arg9: memref<12x16xf32, #tpu.memory_space<vmem>>) attributes {dimension_semantics = [#tpu.dimension_semantics<parallel>, #tpu.dimension_semantics<parallel>], iteration_bounds = array<i64: 2, 1>, scalar_prefetch = 0 : i64, scratch_operands = 1 : i64, tpu.core_type = #tpu.core_type<tc>, window_params = [{transform_indices = @transform_0, window_bounds = array<i64: 1, 4, 16>}, {transform_indices = @transform_1, window_bounds = array<i64: 1, 1, 4, 2>}, {pipeline_mode = #tpu.pipeline_mode<synchronous>, transform_indices = @transform_2, window_bounds = array<i64: 8, 12>}, {pipeline_mode = #tpu.pipeline_mode<synchronous>, transform_indices = @transform_3, window_bounds = array<i64: 8, 1>}, {pipeline_mode = #tpu.pipeline_mode<synchronous>, transform_indices = @transform_4, window_bounds = array<i64: 4, 4>}, {pipeline_mode = #tpu.pipeline_mode<synchronous>, transform_indices = @transform_5, window_bounds = array<i64: 4, 1>}, {transform_indices = @transform_6, window_bounds = array<i64: 1, 4, 16>}]} {
    %c0 = arith.constant 0 : index
    %c0_0 = arith.constant 0 : index
    %c0_1 = arith.constant 0 : index
    %0 = vector.load %arg2[%c0, %c0_0, %c0_1] : memref<1x4x16xf32, #tpu.memory_space<vmem>>, vector<1x4x16xf32>
    %1 = vector.shape_cast %0 : vector<1x4x16xf32> to vector<4x16xf32>
    %c0_2 = arith.constant 0 : index
    %c0_3 = arith.constant 0 : index
    %c0_4 = arith.constant 0 : index
    %c0_5 = arith.constant 0 : index
    %2 = vector.load %arg3[%c0_2, %c0_3, %c0_4, %c0_5] : memref<1x1x4x2xf32, #tpu.memory_space<vmem>>, vector<1x1x4x2xf32>
    %3 = vector.shape_cast %2 : vector<1x1x4x2xf32> to vector<4x2xf32>
    %4 = tpu.iota {dimensions = array<i32: 1>} : vector<4x16xi32>
    %c0_i32 = arith.constant 0 : i32
    %5 = vector.broadcast %c0_i32 : i32 to vector<4x16xi32>
    %6 = arith.cmpi eq, %4, %5 : vector<4x16xi32>
    %7 = vector.extract_strided_slice %3 {offsets = [0, 0], sizes = [4, 1], strides = [1, 1]} : vector<4x2xf32> to vector<4x1xf32>
    %c1_i32 = arith.constant 1 : i32
    %8 = tpu.dynamic_rotate %1 by %c1_i32 dim 1 : vector<4x16xf32>, i32 -> vector<4x16xf32>
    %9 = vector.shape_cast %7 : vector<4x1xf32> to vector<4x1xf32>
    %10 = vector.broadcast %9 : vector<4x1xf32> to vector<4x16xf32>
    %11 = arith.select %6, %10, %8 : vector<4x16xi1>, vector<4x16xf32>
    %c15_i32 = arith.constant 15 : i32
    %12 = vector.broadcast %c15_i32 : i32 to vector<4x16xi32>
    %13 = arith.cmpi eq, %4, %12 : vector<4x16xi32>
    %14 = vector.extract_strided_slice %3 {offsets = [0, 1], sizes = [4, 1], strides = [1, 1]} : vector<4x2xf32> to vector<4x1xf32>
    %c15_i32_6 = arith.constant 15 : i32
    %15 = tpu.dynamic_rotate %1 by %c15_i32_6 dim 1 : vector<4x16xf32>, i32 -> vector<4x16xf32>
    %16 = vector.shape_cast %14 : vector<4x1xf32> to vector<4x1xf32>
    %17 = vector.broadcast %16 : vector<4x1xf32> to vector<4x16xf32>
    %18 = arith.select %13, %17, %15 : vector<4x16xi1>, vector<4x16xf32>
    %c0_7 = arith.constant 0 : index
    %c0_8 = arith.constant 0 : index
    %19 = vector.load %arg9[%c0_7, %c0_8] : memref<12x16xf32, #tpu.memory_space<vmem>>, vector<4x16xf32>
    tpu.vector_store %arg9[%c0_7, %c0_8], %11 {strides = array<i32>} : memref<12x16xf32, #tpu.memory_space<vmem>>, vector<4x16xf32>,
    %c4 = arith.constant 4 : index
    %c0_9 = arith.constant 0 : index
    %20 = vector.load %arg9[%c4, %c0_9] : memref<12x16xf32, #tpu.memory_space<vmem>>, vector<4x16xf32>
    tpu.vector_store %arg9[%c4, %c0_9], %1 {strides = array<i32>} : memref<12x16xf32, #tpu.memory_space<vmem>>, vector<4x16xf32>,
    %c8 = arith.constant 8 : index
    %c0_10 = arith.constant 0 : index
    %21 = vector.load %arg9[%c8, %c0_10] : memref<12x16xf32, #tpu.memory_space<vmem>>, vector<4x16xf32>
    tpu.vector_store %arg9[%c8, %c0_10], %18 {strides = array<i32>} : memref<12x16xf32, #tpu.memory_space<vmem>>, vector<4x16xf32>,
    %c0_11 = arith.constant 0 : index
    %c0_12 = arith.constant 0 : index
    %22 = vector.load %arg4[%c0_11, %c0_12] : memref<8x12xf32, #tpu.memory_space<vmem>>, vector<8x12xf32>
    %c0_13 = arith.constant 0 : index
    %c0_14 = arith.constant 0 : index
    %23 = vector.load %arg9[%c0_13, %c0_14] : memref<12x16xf32, #tpu.memory_space<vmem>>, vector<12x16xf32>
    %cst = arith.constant dense<0.000000e+00> : vector<8x16xf32>
    %24 = tpu.matmul %22, %23, %cst {dimension_numbers = #tpu.dot_dimension_numbers<[1], [0], [0], [1], [0, 0, 1, 1], [], []>} : vector<8x12xf32>, vector<12x16xf32>, vector<8x16xf32> -> vector<8x16xf32>
    %c0_15 = arith.constant 0 : index
    %c0_16 = arith.constant 0 : index
    %25 = vector.load %arg5[%c0_15, %c0_16] : memref<8x1xf32, #tpu.memory_space<vmem>>, vector<8x1xf32>
    %26 = vector.broadcast %25 : vector<8x1xf32> to vector<8x16xf32>
    %27 = arith.addf %24, %26 : vector<8x16xf32>
    %28 = vector.extract_strided_slice %27 {offsets = [0, 0], sizes = [4, 16], strides = [1, 1]} : vector<8x16xf32> to vector<4x16xf32>
    %29 = math.tanh %28 : vector<4x16xf32>
    %30 = vector.extract_strided_slice %27 {offsets = [4, 0], sizes = [4, 16], strides = [1, 1]} : vector<8x16xf32> to vector<4x16xf32>
    %31 = arith.negf %30 : vector<4x16xf32>
    %32 = math.exp %31 : vector<4x16xf32>
    %cst_17 = arith.constant 1.000000e+00 : f32
    %33 = vector.broadcast %cst_17 : f32 to vector<4x16xf32>
    %34 = arith.addf %33, %32 : vector<4x16xf32>
    %35 = arith.divf %33, %34 : vector<4x16xf32>
    %36 = arith.mulf %29, %35 : vector<4x16xf32>
    %37 = arith.addf %36, %1 : vector<4x16xf32>
    %c0_18 = arith.constant 0 : index
    %c0_19 = arith.constant 0 : index
    %38 = vector.load %arg6[%c0_18, %c0_19] : memref<4x4xf32, #tpu.memory_space<vmem>>, vector<4x4xf32>
    %cst_20 = arith.constant dense<0.000000e+00> : vector<4x16xf32>
    %39 = tpu.matmul %38, %37, %cst_20 {dimension_numbers = #tpu.dot_dimension_numbers<[1], [0], [0], [1], [0, 0, 1, 1], [], []>} : vector<4x4xf32>, vector<4x16xf32>, vector<4x16xf32> -> vector<4x16xf32>
    %c0_21 = arith.constant 0 : index
    %c0_22 = arith.constant 0 : index
    %40 = vector.load %arg7[%c0_21, %c0_22] : memref<4x1xf32, #tpu.memory_space<vmem>>, vector<4x1xf32>
    %41 = vector.broadcast %40 : vector<4x1xf32> to vector<4x16xf32>
    %42 = arith.addf %39, %41 : vector<4x16xf32>
    %cst_23 = arith.constant 0.000000e+00 : f32
    %43 = vector.broadcast %cst_23 : f32 to vector<4x16xf32>
    %44 = arith.maximumf %42, %43 : vector<4x16xf32>
    %c0_24 = arith.constant 0 : index
    %c0_25 = arith.constant 0 : index
    %c0_26 = arith.constant 0 : index
    %45 = vector.load %arg8[%c0_24, %c0_25, %c0_26] : memref<1x4x16xf32, #tpu.memory_space<vmem>>, vector<1x4x16xf32>
    %46 = vector.shape_cast %45 : vector<1x4x16xf32> to vector<4x16xf32>
    %47 = vector.shape_cast %44 : vector<4x16xf32> to vector<1x4x16xf32>
    tpu.vector_store %arg8[%c0_24, %c0_25, %c0_26], %47 {strides = array<i32>} : memref<1x4x16xf32, #tpu.memory_space<vmem>>, vector<1x4x16xf32>,
    return
  }
  func.func @transform_0(%arg0: i32, %arg1: i32) -> (i32, i32, i32) {
    %c0_i32 = arith.constant 0 : i32
    %c0_i32_0 = arith.constant 0 : i32
    return %arg0, %c0_i32, %arg1 : i32, i32, i32
  }
  func.func @transform_1(%arg0: i32, %arg1: i32) -> (i32, i32, i32, i32) {
    %c0_i32 = arith.constant 0 : i32
    %c0_i32_0 = arith.constant 0 : i32
    %c0_i32_1 = arith.constant 0 : i32
    return %arg0, %arg1, %c0_i32, %c0_i32_0 : i32, i32, i32, i32
  }
  func.func @transform_2(%arg0: i32, %arg1: i32) -> (i32, i32) {
    %c0_i32 = arith.constant 0 : i32
    %c0_i32_0 = arith.constant 0 : i32
    %c0_i32_1 = arith.constant 0 : i32
    return %c0_i32, %c0_i32_0 : i32, i32
  }
  func.func @transform_3(%arg0: i32, %arg1: i32) -> (i32, i32) {
    %c0_i32 = arith.constant 0 : i32
    %c0_i32_0 = arith.constant 0 : i32
    %c0_i32_1 = arith.constant 0 : i32
    return %c0_i32, %c0_i32_0 : i32, i32
  }
  func.func @transform_4(%arg0: i32, %arg1: i32) -> (i32, i32) {
    %c0_i32 = arith.constant 0 : i32
    %c0_i32_0 = arith.constant 0 : i32
    %c0_i32_1 = arith.constant 0 : i32
    return %c0_i32, %c0_i32_0 : i32, i32
  }
  func.func @transform_5(%arg0: i32, %arg1: i32) -> (i32, i32) {
    %c0_i32 = arith.constant 0 : i32
    %c0_i32_0 = arith.constant 0 : i32
    %c0_i32_1 = arith.constant 0 : i32
    return %c0_i32, %c0_i32_0 : i32, i32
  }
  func.func @transform_6(%arg0: i32, %arg1: i32) -> (i32, i32, i32) {
    %c0_i32 = arith.constant 0 : i32
    %c0_i32_0 = arith.constant 0 : i32
    return %arg0, %c0_i32, %arg1 : i32, i32, i32
  }
}

</mosaic_0001>

<bundles_post_ra>
// kernel: tpu_custom_call.1
= control target key start
LH: loop header
LB: loop body
LE: loop exit
PB: predicated region body
PF: predicated region fallthrough
CT: control target
= control target key end

     0   :  { %11 = vsyncpa [#allocation4], 0  ;;  %s998_s0 = inlined_call_operand.vmem [shape: f32[2,4,16], index: 0, kind: input, shape index: {}]   ;;  %s999_s1 = inlined_call_operand.vmem [shape: f32[2,1,4,2], index: 1, kind: input, shape index: {}]   ;;  %s1000_s2 = inlined_call_operand.vmem [shape: f32[8,12], index: 2, kind: input, shape index: {}]   ;;  %s1001_s3 = inlined_call_operand.vmem [shape: f32[8,1], index: 3, kind: input, shape index: {}]   ;;  %s1002_s4 = inlined_call_operand.vmem [shape: f32[4,4], index: 4, kind: input, shape index: {}]   ;;  %s1003_s5 = inlined_call_operand.vmem [shape: f32[4,1], index: 5, kind: input, shape index: {}]   ;;  %s1004_s6 = inlined_call_operand.hbm [shape: f32[2,4,16], index: 6, kind: output, shape index: {}]  }
   0x1   :  { %13 = vsyncpa [#allocation4 + $0x1], 0  ;;  %s858_s21 = smov 0   ;;  %s860_s22 = smov 0  }
   0x2   :  { %s862_s23 = smov 0   ;;  %s864_s24 = smov 0  }
   0x3   :  { %s866_s25 = smov 0   ;;  %s868_s26 = smov 0  }
   0x4 LB: > { %s621_s27 = sadd.s32 4294967295, %s811_s26   ;;  %s622_s28 = sadd.s32 4294967294, %s811_s26   ;;  %s811_s26 = sphi %s868_s26, %s19_s26   ;;  %s807_s25 = sphi %s866_s25, %s1011_s25   ;;  %s803_s24 = sphi %s864_s24, %s1010_s24   ;;  %s799_s23 = sphi %s862_s23, %s1009_s23   ;;  %s795_s22 = sphi %s860_s22, %s1008_s22   ;;  %s791_s21 = sphi %s858_s21, %s1007_s21  }
   0x5   : > { %s31_s29 = sadd.s32 1, %s807_s25  ;;  %s180_s30 = sadd.s32 1, %s799_s23 }
   0x6   : > { %p33_p0 = scmp.ge.s32.totalorder %s31_s29, 2  ;;  %p190_p1 = scmp.ne.s32.totalorder %s799_s23, %s795_s22 }
   0x7   : > { %p191_p2 = scmp.eq.s32.totalorder %s621_s27, 1  ;;  %p196_p3 = scmp.ne.s32.totalorder %s795_s22, %s791_s21 }
   0x8   : > { %s1013_s29 = smov (%p33_p0, %s31_s29), 0  ;;  %p197_p5 = scmp.eq.s32.totalorder %s622_s28, 1 }
   0x9   : > { %p898_p4 = por %p191_p2, %p190_p1  ;;  %s175_s8 = ssub.s32 %s807_s25, %s1013_s29 }
   0xa   : > { %p625_p6 = scmp.ge.s32.totalorder %s811_s26, 1  ;;  %p178_p7 = scmp.eq.s32.totalorder %s175_s8, 0 }
   0xb   : > { %p905_p8 = por %p197_p5, %p196_p3  ;;  %p247_p9 = scmp.lt.s32.totalorder %s811_s26, 3 }
   0xc   : > { %s911_s10 = scalar_select %p178_p7, %s799_s23, %s180_s30  }
   0xd   : > { %p248_p10 = pnand %p625_p6, %p247_p9 }
   0xe   : > { %p286_p11 = scmp.lt.s32.totalorder (!%p248_p10), %s803_s24, 1  ;;  %v813_v0 = vmov (!%p248_p10), 0   ;;  %s814_s19 = smov (!%p248_p10), 16   ;;  %v815_v3 = vmov (!%p248_p10), 1   ;;  %vm331_vm0 = vcmask (!%p248_p10), 125952   ;;  %vm305_vm1 = vcmask (!%p248_p10), 1047680  }
   0xf   : > { %251 = sbr.rel (%p248_p10) target bundleno = 865 (0x361), region = 44  ;;  %723 = vset.pattern.permute.xlu1 (!%p248_p10), %v813_v0  ;;  %725 = vset.pattern.permute.xlu0 (!%p248_p10), %v813_v0  ;;  %v816_v6 = vmov (!%p248_p10), 0.0|0.0   ;;  %vm817_vm2 = vmmov (!%p248_p10), 0   ;;  %v818_v9 = vmov (!%p248_p10), 0.0   ;;  %s819_s20 = smov (!%p248_p10), 127   ;;  %v338_v10 = vld [vmem:[%s1001_s3] sm:$0xff] (!%p248_p10)  ;;  %v302_v12 = vlaneseq (!%p248_p10) }
  0x10   : > { %655 = vmatprep.subr.bf16.mxu0 (!%p248_p10), %v816_v6  ;;  %647 = vmatprep.mubr.msk.f32.mxu0 (!%p248_p10), %vm817_vm2, %v818_v9  ;;  %s820_s27 = smov (!%p248_p10), 113   ;;  %vm348_vm5 = vcmask (!%p248_p10), 1043456   ;;  %vm821_vm6 = vmmov (!%p248_p10), 1   ;;  %v335_v22 = vld [vmem:[%s1000_s2] sm:$0xff] (!%p248_p10)  ;;  %vm344_vm8 = vcmask (!%p248_p10), 97280   ;;  %vm441_vm9 = vcmask (!%p248_p10), 31744  }
  0x11   : > { %650 = vmatprep.subr.mxu1 (!%p248_p10), %v818_v9  ;;  %652 = vmatprep.mubr.msk.f32.mxu1 (!%p248_p10), %vm817_vm2, %v818_v9  ;;  %v303_v14 = vand.u32 (!%p248_p10), 127, %v302_v12  ;;  %vm657_vm7 = vmpackc.low (!%p248_p10), %vm348_vm5, %vm821_vm6  ;;  %v435_v23 = vld [vmem:[%s1003_s5] sm:$0xf] (!%p248_p10)  ;;  %s283_s16 = sand.u32 (!%p248_p10), 1, %s795_s22  }
  0x12   : > { %v434_v36 = vld [vmem:[%s1002_s4] sm:$0xf] (!%p248_p10)  ;;  %s626_s17 = sshll.u32 (!%p248_p10), %s283_s16, 2  ;;  %s521_s8 = scalar_lea.sflag (!%p248_p10), [#allocation4], %s283_s16 }
  0x13   : > { %vm322_vm3 = vcmp.eq.s32.totalorder (!%p248_p10), %v303_v14, 15  ;;  %vm304_vm4 = vcmp.eq.s32.totalorder (!%p248_p10), %v303_v14, 0 }
  0x16   : > { %s287_s11 = scalar_select %p286_p11, %s803_s24, 1 }
  0x18   : > { %s627_s12 = sshll.u32 %s287_s11, 2 }
  0x19   : > { %s292_s15 = scalar_lea.vmem %s998_s0, %s627_s12  ;;  %s299_s18 = scalar_lea.vmem %s999_s1, %s627_s12 }
  0x1a   : > { %v921_v1 = vld [vmem:[%s292_s15] sm:$0xf] }
  0x1b   : > { %v301_v2 = vld [vmem:[%s299_s18] sm:$0xf]  ;;  %306 = vrot.lane.b32.xlu0 %v921_v1, %s814_s19  ;;  %333 = vst.msk [vmem:[#allocation2 + $0x4] sm:$0xf] %vm331_vm0, %v921_v1  ;;  %s635_s18 = sshll.u32 %s803_s24, 6  ;;  %s822_s24 = smov [#allocation3]  }
  0x1c   : > { %314 = vperm.xlu1 %723, %v301_v2   ;;  %s950_s30 = scalar_lea.hbm %s1004_s6, %s635_s18  ;;  %s737_s12 = sshll.u32 %s822_s24, 4  ;;  %s738_s12 = int_to_ptr.vmem [resolvable:$false] %s737_s12 }
  0x1d   : > { %s739_s13 = scalar_lea.vmem %s738_s12, 128 }
  0x20   : > { %724 = vset.pattern.permute.xlu1 %v815_v3 }
  0x21   : > { %324 = vperm.xlu1 %724, %v301_v2  }
  0x25   : > { %726 = vset.pattern.permute.xlu1 %v813_v0 }
  0x8d   : > { %v307_v4 = vpop.permute.xlu0 %306 }
  0x8e   : > { %v308_v5 = vsel %vm305_vm1, %v307_v4, %v921_v1 }
  0x8f   : > { %309 = vrot.lane.b32.xlu0 %v308_v5, %s814_s19  ;;  %s285_s19 = scalar_lea.vmem [#allocation3], %s626_s17 }
  0x9b   : > { %v315_v11 = vpop.permute.xlu1 %314 }
  0xa0   : > { %v325_v13 = vpop.permute.xlu1 %324 }
 0x101   : > { %v310_v7 = vpop.permute.xlu0 %309 }
 0x102   : > { %v311_v8 = vsel %vm305_vm1, %v310_v7, %v921_v1 }
 0x103   : > { %327 = vrot.lane.b32.xlu1 %v311_v8, %s819_s20  ;;  %318 = vrot.lane.b32.xlu0 %v311_v8, %s820_s27  ;;  %s535_s20 = sshll.u32 %s285_s19, 4  ;;  %s952_s20 = int_to_ptr.vmem [resolvable:$true] %s535_s20 }
 0x104   : > { %s733_s11 = scalar_lea.vmem %s952_s20, 64  ;;  %p740_p1 = scmp.lt.s32.totalorder %s952_s20, %s738_s12 }
 0x105   : > { %p734_p12 = scmp.ne.s32.totalorder %s952_s20, %s733_s11  ;;  %p741_p2 = scmp.lt.s32.totalorder %s739_s13, %s733_s11 }
 0x107   : > { %341 = vperm.xlu0 %725, %v338_v10   ;;  %438 = vperm.xlu1 %726, %v435_v23   ;;  %p735_p13 = pnand %p734_p12, %p898_p4  ;;  %p742_p3 = por %p741_p2, %p740_p1 }
 0x109   : > { %p736_p0 = pneg %p735_p13 }
 0x10b   : > { %p743_p5 = pnand %p742_p3, %p736_p0 }
 0x175   : > { %v328_v15 = vpop.permute.xlu1 %327  ;;  %v319_v16 = vpop.permute.xlu0 %318 }
 0x176   : > { %v330_v17 = vsel %vm322_vm3, %v325_v13, %v328_v15  ;;  %v321_v18 = vsel %vm304_vm4, %v315_v11, %v319_v16 }
 0x177   : > { %334 = vst.msk [vmem:[#allocation2 + $0x8] sm:$0xf] %vm331_vm0, %v330_v17  ;;  %332 = vst.msk [vmem:[#allocation2] sm:$0xf] %vm331_vm0, %v321_v18 }
 0x17e   : > { %v336_v19 = vld [vmem:[#allocation2] sm:$0xff]  ;;  %v337_v20 = vld [vmem:[#allocation2 + $0x8] sm:$0xf] }
 0x17f   : > { %v656_v21 = vpack.c.bf16 %v337_v20, %v336_v19 }
 0x181   : > { %658 = vmatpush3.bf16.msk.msra.mxu0 %vm657_vm7, %v656_v21 }
 0x184   : > { %648 = vmatmul.mubr.msk.f32.vlgmr.msra.gmra.mrb[0].mxu0 %vm344_vm8, %v335_v22 }
 0x186   : > { %v342_v24 = vpop.permute.xlu0 %341  ;;  %v439_v37 = vpop.permute.xlu1 %438 }
 0x257   : > { %v418_v25 = vpop.f32.mrb[0].mxu0 }
 0x258   : > { %v419_v26 = vadd.f32 %v418_v25, %v342_v24  ;;  %v649_v27 = vpop.f32.mrb[1].mxu0 }
 0x25a   : > { %v631_v28 = vmul.f32 -1.442695, %v419_v26 }
 0x25c   : > { %727 = vpow2.f32 %v631_v28 }
 0x266   : > { %v728_v29 = vpop.eup %727 }
 0x267   : > { %v426_v30 = vadd.f32 1.0, %v728_v29 }
 0x269   : > { %729 = vrcp.f32 %v426_v30 }
 0x26a   : > { %731 = vtanh.f32 %v419_v26 }
 0x273   : > { %v730_v31 = vpop.eup %729 }
 0x274   : > { %v430_v32 = vrot.slane %v730_v31, 4  ;;  %v732_v33 = vpop.eup %731 }
 0x276   : > { %v432_v34 = vmul.f32 %v732_v33, %v430_v32 }
 0x278   : > { %v433_v35 = vadd.f32 %v432_v34, %v921_v1 }
 0x27a   : > { %651 = vmatpush3.msk.msra.mxu1 %vm348_vm5, %v433_v35 }
 0x27b   : > { %653 = vmatmul.mubr.msk.f32.vlgmr.msra.gmra.mrb[0].mxu1 %vm441_vm9, %v434_v36 }
 0x34e   : > { %v514_v38 = vpop.f32.mrb[0].mxu1 }
 0x34f   : > { %v515_v39 = vadd.f32 %v514_v38, %v439_v37  ;;  %v654_v40 = vpop.f32.mrb[1].mxu1 }
 0x351   : > { %v518_v41 = vmax.f32 %v515_v39, 0.0 }
 0x353   : > { %519 = vst.msk [vmem:[%s285_s19] sm:$0xf] %vm331_vm0, %v518_v41 }
 0x354   : > { %746 = shalt.err (!%p743_p5)
}
 0x355   : > { %s747_s14 = scalar_lea.hbm %s950_s30, 64  ;;  %s751_s17 = scalar_lea.hbm %s1004_s6, 128 }
 0x356   : > { %p748_p6 = scmp.ne.s32.totalorder %s950_s30, %s747_s14  ;;  %p752_p10 = scmp.lt.u32.totalorder %s950_s30, %s1004_s6 }
 0x357   : > { %p753_p11 = scmp.lt.u32.totalorder %s751_s17, %s747_s14  ;;  %p755_p13 = scmp.lt.u32.totalorder %s747_s14, %s950_s30 }
 0x358   : > { %p749_p7 = pnand %p748_p6, %p898_p4 }
 0x359   : > { %p754_p12 = por %p753_p11, %p752_p10 }
 0x35a   : > { %p750_p9 = pneg %p749_p7 }
 0x35b   : > { %p756_p0 = por %p755_p13, %p754_p12 }
 0x35d   : > { %p757_p1 = pnand %p756_p0, %p750_p9 }
 0x35f   : > { %760 = shalt.err (!%p757_p1)
}
 0x360   : > { %659 = dma.vmem_to_hbm [thread:$0]  (%p898_p4), %s952_s20, 64, %s950_s30, %s521_s8  }
 0x361 PF: > { %p665_p2 = scmp.ge.s32.totalorder %s811_s26, 2  ;;  %s547_s27 = sand.u32 1, %s791_s21  }
 0x362   : > { %s548_s28 = scalar_lea.sflag [#allocation4], %s547_s27 }
 0x363   : > { %p662_p3 = pnand %p665_p2, %p905_p8 }
 0x365   : > { %786 = dma.done.wait (!%p662_p3), %s548_s28, 64  }
 0x366   : > { %788 = vsyncadd (!%p662_p3), %s548_s28, 4294967232  ;;  %s19_s26 = sadd.s32 1, %s811_s26   ;;  %s1007_s21 = smov %s795_s22 }
 0x367   : > { %p16_p5 = scmp.ge.s32.totalorder %s19_s26, 4   ;;  %s1008_s22 = smov %s799_s23 }
 0x368   : > { %s1009_s23 = smov %s911_s10  ;;  %s1010_s24 = smov %s807_s25 }
 0x369   : > { %s1011_s25 = smov %s1013_s29  ;;  %18 = sbr.rel (!%p16_p5) target bundleno = 4 (0x4), region = 82 }
 0x370   :  { %553 = vsyncpa [#allocation4], 1 }
 0x371   :  { %555 = vsyncpa [#allocation4 + $0x1], 1 }

</bundles_post_ra>
